<compile_context>
chip_gen: v6e
topology: v6e:2x2x1
jax: 0.10.0
libtpu: 0.0.40
codegen_flags: <defaults>
</compile_context>

<pallas_src>
from typing import NamedTuple

import jax
import jax.numpy as jnp
from jax.experimental import pallas as pl
from jax.experimental.pallas import tpu as pltpu

IN_DIM = 320
HID = 50
OUT = 10

HID_PAD = 128   # lane-dense hidden width (zero-padded columns)
OUT_PAD = 128   # lane-dense output width (zero-padded columns)


def _round_up(x, m):
    return (x + m - 1) // m * m


# --------------------------------------------------------------------------
# Kernel
# --------------------------------------------------------------------------
def fc_mnist_kernel(x_ref, w1_ref, b1_ref, w2_ref, b2_ref, o_ref):
    # fc1 (MXU matmul, f32 accumulation) + bias + ReLU.
    # Padded hidden lanes are exactly 0 (zero weight columns, zero bias).
    h = jnp.dot(x_ref[...], w1_ref[...], preferred_element_type=jnp.float32)
    h = jnp.maximum(h + b1_ref[...], 0.0)
    # dropout: identity in eval mode.
    # fc2. Padded output lanes stay exactly 0; sliced off in the wrapper.
    y = jnp.dot(h.astype(w2_ref.dtype), w2_ref[...],
                preferred_element_type=jnp.float32)
    o_ref[...] = (y + b2_ref[...]).astype(o_ref.dtype)


# --------------------------------------------------------------------------
# Parameter preparation (do ONCE, not per forward call)
# --------------------------------------------------------------------------
class FcMnistParams(NamedTuple):
    w1: jax.Array   # [IN_DIM, HID_PAD]  (f32 or bf16)
    b1: jax.Array   # [1, HID_PAD]       (f32)
    w2: jax.Array   # [HID_PAD, OUT_PAD] (f32 or bf16)
    b2: jax.Array   # [1, OUT_PAD]       (f32)


def prepare_params(w1, b1, w2, b2, *, use_bf16=True):
    """Zero-pad weights/biases to lane-dense widths and (optionally) cast to bf16.

    w1: [320, 50], b1: [50], w2: [50, 10], b2: [10]  (already [in, out])."""
    w1p = jnp.zeros((IN_DIM, HID_PAD), jnp.float32).at[:, :HID].set(w1)
    b1p = jnp.zeros((1, HID_PAD), jnp.float32).at[:, :HID].set(b1)
    w2p = jnp.zeros((HID_PAD, OUT_PAD), jnp.float32).at[:HID, :OUT].set(w2)
    b2p = jnp.zeros((1, OUT_PAD), jnp.float32).at[:, :OUT].set(b2)
    if use_bf16:
        w1p = w1p.astype(jnp.bfloat16)
        w2p = w2p.astype(jnp.bfloat16)
    return FcMnistParams(w1p, b1p, w2p, b2p)


# --------------------------------------------------------------------------
# Forward wrapper
# --------------------------------------------------------------------------
def fc_mnist_forward(x, params: FcMnistParams, *, batch_tile=1024):
    """x: [B, 320].  params: output of prepare_params().  Returns [B, 10] f32."""
    B = x.shape[0]
    use_bf16 = params.w1.dtype == jnp.bfloat16

    xin = x.astype(jnp.bfloat16) if use_bf16 else x.astype(jnp.float32)

    # ---- batch tiling -----------------------------------------------------
    # Balanced tiles, multiples of 8 sublanes; guarantee >=2 grid steps when
    # possible so the "parallel" axis can shard across both v7x TensorCores.
    batch_tile = max(8, _round_up(batch_tile, 8))
    B8 = _round_up(max(B, 1), 8)
    num_tiles = max(2, pl.cdiv(B8, batch_tile)) if B8 >= 16 else 1
    tile = _round_up(pl.cdiv(B8, num_tiles), 8)
    B_pad = _round_up(B, tile)
    if B_pad != B:
        xin = jnp.pad(xin, ((0, B_pad - B), (0, 0)))
    grid = (B_pad // tile,)

    in_bytes = 2 if use_bf16 else 4
    out_bytes = 2 if use_bf16 else 4
    out_dtype = jnp.bfloat16 if use_bf16 else jnp.float32

    # ---- cost estimate ----------------------------------------------------
    flops = B_pad * (2 * IN_DIM * HID_PAD + 2 * HID_PAD * OUT_PAD)
    bytes_accessed = (B_pad * IN_DIM * in_bytes           # x reads
                      + B_pad * OUT_PAD * out_bytes       # output writes
                      + IN_DIM * HID_PAD * in_bytes       # w1
                      + HID_PAD * OUT_PAD * in_bytes      # w2
                      + 2 * (HID_PAD + OUT_PAD) * 4)      # biases

    # ---- scoped-VMEM limit: tight, derived from the real working set ------
    io_working_set = (tile * IN_DIM * in_bytes            # x tile
                      + tile * OUT_PAD * out_bytes        # out tile
                      + IN_DIM * HID_PAD * in_bytes       # w1
                      + HID_PAD * OUT_PAD * in_bytes      # w2
                      + 2 * (HID_PAD + OUT_PAD) * 4)      # biases
    intermediates = tile * HID_PAD * 4 + tile * OUT_PAD * 4   # h, y (f32)
    vmem_needed = 2 * io_working_set + intermediates          # double-buffered IO
    vmem_limit = int(min(max(int(1.25 * vmem_needed) + (2 << 20), 8 << 20),
                         48 << 20))

    out_padded = pl.pallas_call(
        fc_mnist_kernel,
        out_shape=jax.ShapeDtypeStruct((B_pad, OUT_PAD), out_dtype),
        grid_spec=pltpu.PrefetchScalarGridSpec(
            num_scalar_prefetch=0,
            grid=grid,
            in_specs=[
                pl.BlockSpec((tile, IN_DIM), lambda i: (i, 0)),      # x tile
                pl.BlockSpec((IN_DIM, HID_PAD), lambda i: (0, 0)),   # w1 (resident)
                pl.BlockSpec((1, HID_PAD), lambda i: (0, 0)),        # b1
                pl.BlockSpec((HID_PAD, OUT_PAD), lambda i: (0, 0)),  # w2 (resident)
                pl.BlockSpec((1, OUT_PAD), lambda i: (0, 0)),        # b2
            ],
            out_specs=pl.BlockSpec((tile, OUT_PAD), lambda i: (i, 0)),
        ),
        compiler_params=pltpu.CompilerParams(
            dimension_semantics=("parallel",),
            vmem_limit_bytes=vmem_limit),
        cost_estimate=pl.CostEstimate(
            flops=flops, transcendentals=0, bytes_accessed=bytes_accessed),
    )(xin, params.w1, params.b1, params.w2, params.b2)

    # Cheap contiguous slice outside the kernel: drop batch/lane padding.
    return out_padded[:B, :OUT].astype(jnp.float32)


# --------------------------------------------------------------------------
# Deterministic init mimicking nn.Linear default (uniform +- 1/sqrt(fan_in))
# --------------------------------------------------------------------------
def init_params(key):
    k1, k2, k3, k4 = jax.random.split(key, 4)
    bound1 = 1.0 / jnp.sqrt(IN_DIM)
    bound2 = 1.0 / jnp.sqrt(HID)
    # stored already transposed: [in, out]
    w1 = jax.random.uniform(k1, (IN_DIM, HID), jnp.float32, -bound1, bound1)
    b1 = jax.random.uniform(k2, (HID,), jnp.float32, -bound1, bound1)
    w2 = jax.random.uniform(k3, (HID, OUT), jnp.float32, -bound2, bound2)
    b2 = jax.random.uniform(k4, (OUT,), jnp.float32, -bound2, bound2)
    return w1, b1, w2, b2


if __name__ == "__main__":
    key = jax.random.PRNGKey(0)
    kx, kp = jax.random.split(key)

    B = 13  # small, intentionally not a multiple of 8 (exercises ragged padding
            # and the >=2-grid-step path: tile=8, grid=(2,))
    x = jax.random.normal(kx, (B, IN_DIM), jnp.float32)
    w1, b1, w2, b2 = init_params(kp)

    # pure-JAX reference (eval-mode dropout = identity)
    ref = jnp.maximum(x @ w1 + b1, 0.0) @ w2 + b2

    # f32 path: strict correctness check.
    params_f32 = prepare_params(w1, b1, w2, b2, use_bf16=False)
    out_f32 = jax.block_until_ready(fc_mnist_forward(x, params_f32))
    assert out_f32.shape == (B, OUT)
    assert jnp.allclose(out_f32, ref, atol=1e-4, rtol=1e-4)

    # bf16 path (default; ~2x less HBM traffic): looser tolerance by design.
    params_bf16 = prepare_params(w1, b1, w2, b2, use_bf16=True)
    out_bf16 = jax.block_until_ready(fc_mnist_forward(x, params_bf16))
    assert out_bf16.shape == (B, OUT)
    assert jnp.allclose(out_bf16, ref, atol=6e-2, rtol=6e-2)

    print("KERNEL_OK")
</pallas_src>

<mosaic_0001>
module attributes {stable_mosaic.version = 11 : i64} {
  func.func @fc_mnist_kernel(%arg0: i32, %arg1: memref<8x320xf32, #tpu.memory_space<vmem>>, %arg2: memref<320x128xf32, #tpu.memory_space<vmem>>, %arg3: memref<1x128xf32, #tpu.memory_space<vmem>>, %arg4: memref<128x128xf32, #tpu.memory_space<vmem>>, %arg5: memref<1x128xf32, #tpu.memory_space<vmem>>, %arg6: memref<8x128xf32, #tpu.memory_space<vmem>>) attributes {dimension_semantics = [#tpu.dimension_semantics<parallel>], iteration_bounds = array<i64: 2>, scalar_prefetch = 0 : i64, scratch_operands = 0 : i64, tpu.core_type = #tpu.core_type<tc>, window_params = [{transform_indices = @transform_0, window_bounds = array<i64: 8, 320>}, {pipeline_mode = #tpu.pipeline_mode<synchronous>, transform_indices = @transform_1, window_bounds = array<i64: 320, 128>}, {pipeline_mode = #tpu.pipeline_mode<synchronous>, transform_indices = @transform_2, window_bounds = array<i64: 1, 128>}, {pipeline_mode = #tpu.pipeline_mode<synchronous>, transform_indices = @transform_3, window_bounds = array<i64: 128, 128>}, {pipeline_mode = #tpu.pipeline_mode<synchronous>, transform_indices = @transform_4, window_bounds = array<i64: 1, 128>}, {transform_indices = @transform_5, window_bounds = array<i64: 8, 128>}]} {
    %c0 = arith.constant 0 : index
    %c0_0 = arith.constant 0 : index
    %0 = vector.load %arg1[%c0, %c0_0] : memref<8x320xf32, #tpu.memory_space<vmem>>, vector<8x320xf32>
    %c0_1 = arith.constant 0 : index
    %c0_2 = arith.constant 0 : index
    %1 = vector.load %arg2[%c0_1, %c0_2] : memref<320x128xf32, #tpu.memory_space<vmem>>, vector<320x128xf32>
    %cst = arith.constant dense<0.000000e+00> : vector<8x128xf32>
    %2 = tpu.matmul %0, %1, %cst {dimension_numbers = #tpu.dot_dimension_numbers<[1], [0], [0], [1], [0, 0, 1, 1], [], []>} : vector<8x320xf32>, vector<320x128xf32>, vector<8x128xf32> -> vector<8x128xf32>
    %c0_3 = arith.constant 0 : index
    %c0_4 = arith.constant 0 : index
    %3 = vector.load %arg3[%c0_3, %c0_4] : memref<1x128xf32, #tpu.memory_space<vmem>>, vector<1x128xf32>
    %4 = vector.broadcast %3 : vector<1x128xf32> to vector<8x128xf32>
    %5 = arith.addf %2, %4 : vector<8x128xf32>
    %cst_5 = arith.constant 0.000000e+00 : f32
    %6 = vector.broadcast %cst_5 : f32 to vector<8x128xf32>
    %7 = arith.maximumf %5, %6 : vector<8x128xf32>
    %c0_6 = arith.constant 0 : index
    %c0_7 = arith.constant 0 : index
    %8 = vector.load %arg4[%c0_6, %c0_7] : memref<128x128xf32, #tpu.memory_space<vmem>>, vector<128x128xf32>
    %cst_8 = arith.constant dense<0.000000e+00> : vector<8x128xf32>
    %9 = tpu.matmul %7, %8, %cst_8 {dimension_numbers = #tpu.dot_dimension_numbers<[1], [0], [0], [1], [0, 0, 1, 1], [], []>} : vector<8x128xf32>, vector<128x128xf32>, vector<8x128xf32> -> vector<8x128xf32>
    %c0_9 = arith.constant 0 : index
    %c0_10 = arith.constant 0 : index
    %10 = vector.load %arg5[%c0_9, %c0_10] : memref<1x128xf32, #tpu.memory_space<vmem>>, vector<1x128xf32>
    %11 = vector.broadcast %10 : vector<1x128xf32> to vector<8x128xf32>
    %12 = arith.addf %9, %11 : vector<8x128xf32>
    %c0_11 = arith.constant 0 : index
    %c0_12 = arith.constant 0 : index
    %13 = vector.load %arg6[%c0_11, %c0_12] : memref<8x128xf32, #tpu.memory_space<vmem>>, vector<8x128xf32>
    tpu.vector_store %arg6[%c0_11, %c0_12], %12 {strides = array<i32>} : memref<8x128xf32, #tpu.memory_space<vmem>>, vector<8x128xf32>,
    return
  }
  func.func @transform_0(%arg0: i32) -> (i32, i32) {
    %c0_i32 = arith.constant 0 : i32
    %c0_i32_0 = arith.constant 0 : i32
    return %arg0, %c0_i32 : i32, i32
  }
  func.func @transform_1(%arg0: i32) -> (i32, i32) {
    %c0_i32 = arith.constant 0 : i32
    %c0_i32_0 = arith.constant 0 : i32
    %c0_i32_1 = arith.constant 0 : i32
    return %c0_i32, %c0_i32_0 : i32, i32
  }
  func.func @transform_2(%arg0: i32) -> (i32, i32) {
    %c0_i32 = arith.constant 0 : i32
    %c0_i32_0 = arith.constant 0 : i32
    %c0_i32_1 = arith.constant 0 : i32
    return %c0_i32, %c0_i32_0 : i32, i32
  }
  func.func @transform_3(%arg0: i32) -> (i32, i32) {
    %c0_i32 = arith.constant 0 : i32
    %c0_i32_0 = arith.constant 0 : i32
    %c0_i32_1 = arith.constant 0 : i32
    return %c0_i32, %c0_i32_0 : i32, i32
  }
  func.func @transform_4(%arg0: i32) -> (i32, i32) {
    %c0_i32 = arith.constant 0 : i32
    %c0_i32_0 = arith.constant 0 : i32
    %c0_i32_1 = arith.constant 0 : i32
    return %c0_i32, %c0_i32_0 : i32, i32
  }
  func.func @transform_5(%arg0: i32) -> (i32, i32) {
    %c0_i32 = arith.constant 0 : i32
    %c0_i32_0 = arith.constant 0 : i32
    return %arg0, %c0_i32 : i32, i32
  }
}

</mosaic_0001>

<bundles_post_ra>
// kernel: tpu_custom_call.1
= control target key start
LH: loop header
LB: loop body
LE: loop exit
PB: predicated region body
PF: predicated region fallthrough
CT: control target
= control target key end

     0   :  { %10 = vsyncpa [#allocation3], 0  ;;  %s1267_s0 = inlined_call_operand.hbm [shape: f32[16,320], index: 0, kind: input, shape index: {}]   ;;  %s1268_s1 = inlined_call_operand.hbm [shape: f32[320,128], index: 1, kind: input, shape index: {}]   ;;  %s1269_s2 = inlined_call_operand.vmem [shape: f32[1,128], index: 2, kind: input, shape index: {}]   ;;  %s1270_s3 = inlined_call_operand.hbm [shape: f32[128,128], index: 3, kind: input, shape index: {}]   ;;  %s1271_s4 = inlined_call_operand.vmem [shape: f32[1,128], index: 4, kind: input, shape index: {}]   ;;  %s1272_s5 = inlined_call_operand.hbm [shape: f32[16,128], index: 5, kind: output, shape index: {}]  }
   0x1   :  { %12 = vsyncpa [#allocation3 + $0x1], 0 }
   0x2   :  { %13 = vsyncpa [#allocation6], 0 }
   0x3   :  { %14 = vsyncpa [#allocation4], 0 }
   0x4   :  { %16 = vsyncpa [#allocation4 + $0x1], 0  ;;  %s1056_s18 = smov 0   ;;  %s1058_s19 = smov 0  }
   0x5   :  { %s1060_s20 = smov 0   ;;  %s1062_s21 = smov 0  }
   0x6 LB: > { %s1077_s22 = sadd.s32 4294967295, %s1016_s21   ;;  %s662_s23 = sadd.s32 4294967294, %s1016_s21   ;;  %s1016_s21 = sphi %s1062_s21, %s1294_s21   ;;  %s1012_s20 = sphi %s1060_s20, %s1293_s20   ;;  %s1008_s19 = sphi %s1058_s19, %s1292_s19   ;;  %s1004_s18 = sphi %s1056_s18, %s1291_s18  }
   0x7   : > { %p42_p0 = scmp.ne.s32.totalorder %s1008_s19, %s1004_s18  ;;  %p1273_p1 = scmp.eq.s32.totalorder %s1077_s22, 0 }
   0x8   : > { %p156_p3 = scmp.eq.s32.totalorder %s662_s23, 1  ;;  %p663_p5 = scmp.ge.s32.totalorder %s1016_s21, 1 }
   0x9   : > { %p1086_p4 = por %p1273_p1, %p42_p0  ;;  %p163_p7 = scmp.lt.s32.totalorder %s1016_s21, 3 }
   0xa   : > { %p1091_p6 = por %p156_p3, %p42_p0  ;;  %s1018_s27 = smov [#allocation5]  }
   0xb   : > { %s1277_s24 = scalar_select %p1086_p4, 1, 0 }
   0xc   : > { %s1278_s25 = scalar_select %p1091_p6, 1, 0 }
   0xd   : > { %p1096_p8 = pnand %p663_p5, %p163_p7  ;;  %s175_s28 = sshll.u32 %s1018_s27, 4  ;;  %s176_s28 = int_to_ptr.vmem [resolvable:$true] %s175_s28 }
   0xe   : > { %s1019_s30 = smov [#allocation7]   ;;  %s879_s7 = scalar_lea.vmem %s176_s28, 5120 }
   0xf   : > { %s1279_s26 = scalar_select %p1096_p8, 1, 0 }
  0x10   : > { %p809_p9 = pneg %p1096_p8  ;;  %s191_s6 = sshll.u32 %s1019_s30, 4  ;;  %s192_s6 = int_to_ptr.vmem [resolvable:$true] %s191_s6 }
  0x11   : > { %p880_p13 = scmp.ne.s32.totalorder %s176_s28, %s879_s7  ;;  %p887_p5 = scmp.lt.s32.totalorder %s176_s28, %s176_s28 }
  0x12   : > { %p1105_p11 = pnand %p809_p9, %p1273_p1  ;;  %p888_p7 = scmp.lt.s32.totalorder %s879_s7, %s879_s7 }
  0x14   : > { %p870_p12 = pneg %p1105_p11  ;;  %p889_p10 = por %p888_p7, %p887_p5 }
  0x16   : > { %p882_p0 = pnand %p880_p13, %p870_p12 }
  0x18   : > { %p883_p3 = pneg %p882_p0 }
  0x1a   : > { %p890_p9 = pnand %p889_p10, %p883_p3 }
  0x1c   : > { %893 = shalt.err (!%p890_p9)
}
  0x1d   : > { %s1020_s8 = smov 128   ;;  %s1021_s9 = smov 8  }
  0x1e   : > { %812 = dma.hbm_to_vmem [thread:$0]  (!%p1105_p11), %s1268_s1, 5120, %s176_s28, [#allocation6], %s1020_s8, %s1020_s8, %s1021_s9  }
  0x1f   : > { %s905_s12 = scalar_lea.vmem %s192_s6, 2048  ;;  %p913_p2 = scmp.lt.s32.totalorder %s192_s6, %s192_s6 }
  0x20   : > { %p906_p1 = scmp.ne.s32.totalorder %s192_s6, %s905_s12  ;;  %p914_p6 = scmp.lt.s32.totalorder %s905_s12, %s905_s12 }
  0x22   : > { %p908_p13 = pnand %p906_p1, %p870_p12  ;;  %p915_p5 = por %p914_p6, %p913_p2 }
  0x24   : > { %p909_p0 = pneg %p908_p13 }
  0x26   : > { %p916_p10 = pnand %p915_p5, %p909_p0 }
  0x28   : > { %919 = shalt.err (!%p916_p10)
}
  0x29   : > { %815 = dma.hbm_to_vmem [thread:$0]  (!%p1105_p11), %s1270_s3, 2048, %s192_s6, [#allocation6], %s1020_s8, %s1020_s8, %s1021_s9  }
  0x2a   : > { %s1128_s15 = sadd.s32 1, %s1016_s21   ;;  %s29_s16 = sadd.s32 1, %s1012_s20 }
  0x2b   : > { %s26_s17 = ssub.s32 %s1016_s21, %s1128_s15  ;;  %p36_p1 = scmp.ne.s32.totalorder %s1012_s20, %s1008_s19 }
  0x2c   : > { %p27_p2 = scmp.eq.s32.totalorder %s26_s17, 0  ;;  %p37_p6 = scmp.eq.s32.totalorder %s1016_s21, 0 }
  0x2d   : > { %p1281_p12 = scmp.eq.s32.totalorder %s1077_s22, 1  ;;  %p826_p7 = scmp.lt.s32.totalorder %s1016_s21, 2 }
  0x2e   : > { %s1144_s27 = scalar_select %p27_p2, %s1012_s20, %s29_s16  }
  0x2f   : > { %p1138_p3 = por %p1281_p12, %p36_p1  ;;  %p38_p9 = por %p37_p6, %p36_p1 }
  0x30   : > { %s208_s28 = sand.u32 1, %s1012_s20   ;;  %s795_s30 = smul.u32 384, %s1016_s21 }
  0x31   : > { %s1282_s23 = scalar_select %p1138_p3, 1, 0 }
  0x32   : > { %s794_s29 = smul.u32 24, %s208_s28  ;;  %p1148_p11 = pnand %p826_p7, %p38_p9 }
  0x33   : > { %s1155_s9 = scalar_lea.hbm %s1267_s0, %s795_s30  ;;  %s209_s12 = scalar_lea.sflag [#allocation3], %s208_s28 }
  0x34   : > { %s212_s10 = scalar_lea.vmem [#allocation2], %s794_s29  ;;  %s920_s13 = scalar_lea.hbm %s1155_s9, 384 }
  0x35   : > { %s220_s11 = sshll.u32 %s212_s10, 4  ;;  %p921_p13 = scmp.ne.s32.totalorder %s1155_s9, %s920_s13  ;;  %s221_s11 = int_to_ptr.vmem [resolvable:$true] %s220_s11 }
  0x36   : > { %p922_p0 = pneg %p1148_p11  ;;  %s925_s17 = scalar_lea.hbm %s1267_s0, 768 }
  0x37   : > { %p926_p1 = scmp.lt.s32.totalorder %s1155_s9, %s1267_s0  ;;  %p927_p2 = scmp.lt.s32.totalorder %s925_s17, %s920_s13 }
  0x38   : > { %p923_p5 = pnand %p922_p0, %p921_p13 }
  0x39   : > { %p928_p6 = por %p927_p2, %p926_p1 }
  0x3a   : > { %p924_p10 = pneg %p923_p5 }
  0x3c   : > { %p929_p12 = pnand %p928_p6, %p924_p10 }
  0x3e   : > { %932 = shalt.err (!%p929_p12)
}
  0x3f   : > { %s933_s29 = scalar_lea.vmem %s221_s11, 384  ;;  %s1022_s28 = smov [#allocation2]  }
  0x40   : > { %p934_p7 = scmp.ne.s32.totalorder %s221_s11, %s933_s29  ;;  %s938_s8 = sshll.u32 %s1022_s28, 4  ;;  %s939_s8 = int_to_ptr.vmem [resolvable:$false] %s938_s8 }
  0x41   : > { %s940_s10 = scalar_lea.vmem %s939_s8, 768  ;;  %p941_p13 = scmp.lt.s32.totalorder %s221_s11, %s939_s8 }
  0x42   : > { %p936_p9 = pnand %p934_p7, %p922_p0  ;;  %p942_p5 = scmp.lt.s32.totalorder %s940_s10, %s933_s29 }
  0x44   : > { %p937_p3 = pneg %p936_p9  ;;  %p943_p4 = por %p942_p5, %p941_p13 }
  0x46   : > { %p944_p8 = pnand %p943_p4, %p937_p3 }
  0x48   : > { %947 = shalt.err (!%p944_p8)
}
  0x49   : > { %819 = dma.hbm_to_vmem [thread:$0]  (!%p1148_p11), %s1155_s9, 384, %s221_s11, %s209_s12  }
  0x4a   : > { %p1284_p10 = scmp.ne.s32.totalorder %s1279_s26, 0 }
  0x4b   : > { %s1174_s13 = sand.u32 (!%p1284_p10), 1, %s1008_s19   ;;  %p1285_p0 = scmp.ne.s32.totalorder (!%p1284_p10), %s1277_s24, 0 }
  0x4c   : > { %229 = sbr.rel (%p1284_p10) target bundleno = 530 (0x212), region = 40  ;;  %s232_s16 = scalar_lea.sflag (!%p1284_p10), [#allocation3], %s1174_s13 }
  0x4d   : > { %s796_s14 = smul.u32 (!%p1284_p10), 24, %s1174_s13 }
  0x4f   : > { %s1178_s17 = scalar_lea.vmem (!%p1284_p10), [#allocation2], %s796_s14 }
  0x51   : > { %991 = dma.done.wait (%p1285_p0), %s232_s16, 384  }
  0x52   : > { %993 = vsyncadd (%p1285_p0), %s232_s16, 4294966912  ;;  %p1286_p4 = scmp.eq.s32.totalorder %s1077_s22, 0 }
  0x54   : > { %995 = dma.done.wait (%p1286_p4), [#allocation6], 7168   ;;  %p1287_p8 = pmov %p1286_p4 }
  0x55   : > { %v1023_v0 = vmov 0.0   ;;  %vm1024_vm0 = vmmov 0   ;;  %v304_v1 = vld [vmem:[#allocation5 + $0xf8] sm:$0xff]  ;;  %v303_v3 = vld [vmem:[#allocation5 + $0xf0] sm:$0xff]  ;;  %v302_v5 = vld [vmem:[#allocation5 + $0xe8] sm:$0xff]  ;;  %vm320_vm1 = vcmask 523264  }
  0x56   : > { %997 = vsyncadd (%p1287_p8), [#allocation6], 4294960128  ;;  %740 = vmatprep.subr.mxu1 %v1023_v0  ;;  %756 = vmatprep.mubr.msk.f32.mxu1 %vm1024_vm0, %v1023_v0  ;;  %v288_v2 = vld [vmem:[#allocation5 + $0x78] sm:$0xff]  ;;  %v287_v4 = vld [vmem:[#allocation5 + $0x70] sm:$0xff]  ;;  %s671_s6 = sshll.u32 %s1174_s13, 3  ;;  %s676_s12 = sshll.u32 %s1077_s22, 7 }
  0x57   : > { %679 = vmatprep.subr.mxu0 %v304_v1  ;;  %v286_v6 = vld [vmem:[#allocation5 + $0x68] sm:$0xff]  ;;  %v301_v7 = vld [vmem:[#allocation5 + $0xe0] sm:$0xff]  ;;  %v300_v9 = vld [vmem:[#allocation5 + $0xd8] sm:$0xff]  ;;  %s269_s7 = scalar_lea.vmem [#allocation8], %s671_s6  ;;  %s1230_s8 = scalar_lea.hbm %s1272_s5, %s676_s12 }
  0x58   : > { %680 = vmatpush3.msra.mxu0 %v288_v2  ;;  %v285_v8 = vld [vmem:[#allocation5 + $0x60] sm:$0xff]  ;;  %v284_v10 = vld [vmem:[#allocation5 + $0x58] sm:$0xff]  ;;  %v299_v12 = vld [vmem:[#allocation5 + $0xd0] sm:$0xff]  ;;  %s573_s30 = sshll.u32 %s269_s7, 4  ;;  %s560_s10 = scalar_lea.sflag [#allocation4], %s1174_s13  ;;  %s574_s30 = int_to_ptr.vmem [resolvable:$true] %s573_s30 }
  0x59   : > { %681 = vmatprep.subr.mxu0 %v303_v3  ;;  %v312_v11 = vld [vmem:[#allocation5 + $0x138] sm:$0xff]  ;;  %v311_v13 = vld [vmem:[#allocation5 + $0x130] sm:$0xff]  ;;  %v310_v15 = vld [vmem:[#allocation5 + $0x128] sm:$0xff]  ;;  %s948_s14 = scalar_lea.vmem %s574_s30, 128  ;;  %p1288_p11 = scmp.ne.s32.totalorder %s1282_s23, 0 }
  0x5a   : > { %682 = vmatpush3.msra.mxu0 %v287_v4  ;;  %741 = vmatpush3.msra.mxu1 %v312_v11  ;;  %v283_v14 = vld [vmem:[#allocation5 + $0x50] sm:$0xff]  ;;  %v298_v16 = vld [vmem:[#allocation5 + $0xc8] sm:$0xff]  ;;  %v309_v18 = vld [vmem:[#allocation5 + $0x120] sm:$0xff]  ;;  %p949_p3 = scmp.ne.s32.totalorder %s574_s30, %s948_s14  ;;  %s1025_s16 = smov [#allocation8]  }
  0x5b   : > { %683 = vmatprep.subr.mxu0 %v302_v5  ;;  %742 = vmatprep.subr.mxu1 %v1023_v0  ;;  %v282_v17 = vld [vmem:[#allocation5 + $0x48] sm:$0xff]  ;;  %v297_v19 = vld [vmem:[#allocation5 + $0xc0] sm:$0xff]  ;;  %v308_v21 = vld [vmem:[#allocation5 + $0x118] sm:$0xff]  ;;  %s952_s22 = sshll.u32 %s1025_s16, 4  ;;  %s953_s22 = int_to_ptr.vmem [resolvable:$false] %s952_s22 }
  0x5c   : > { %684 = vmatpush3.msra.mxu0 %v286_v6  ;;  %743 = vmatpush3.msra.mxu1 %v311_v13  ;;  %v281_v20 = vld [vmem:[#allocation5 + $0x40] sm:$0xff]  ;;  %v296_v22 = vld [vmem:[#allocation5 + $0xb8] sm:$0xff]  ;;  %v295_v25 = vld [vmem:[#allocation5 + $0xb0] sm:$0xff]  ;;  %p950_p1 = pnand %p949_p3, %p1288_p11  ;;  %p955_p6 = scmp.lt.s32.totalorder %s574_s30, %s953_s22 }
  0x5d   : > { %685 = vmatprep.subr.mxu0 %v301_v7  ;;  %744 = vmatprep.subr.mxu1 %v1023_v0  ;;  %v280_v23 = vld [vmem:[#allocation5 + $0x38] sm:$0xff]  ;;  %v307_v26 = vld [vmem:[#allocation5 + $0x110] sm:$0xff]  ;;  %v294_v28 = vld [vmem:[#allocation5 + $0xa8] sm:$0xff] }
  0x5e   : > { %686 = vmatpush3.msra.mxu0 %v285_v8  ;;  %745 = vmatpush3.msra.mxu1 %v310_v15  ;;  %v271_v24 = vld [vmem:[%s1178_s17 + $0x8] sm:$0xff]  ;;  %v306_v29 = vld [vmem:[#allocation5 + $0x108] sm:$0xff]  ;;  %v293_v31 = vld [vmem:[#allocation5 + $0xa0] sm:$0xff]  ;;  %p951_p2 = pneg %p950_p1 }
  0x5f   : > { %687 = vmatprep.subr.mxu0 %v300_v9  ;;  %746 = vmatprep.subr.mxu1 %v1023_v0  ;;  %v279_v27 = vld [vmem:[#allocation5 + $0x30] sm:$0xff]  ;;  %v278_v30 = vld [vmem:[#allocation5 + $0x28] sm:$0xff]  ;;  %v305_v32 = vld [vmem:[#allocation5 + $0x100] sm:$0xff] }
  0x60   : > { %688 = vmatpush3.msra.mxu0 %v284_v10  ;;  %747 = vmatpush3.msra.mxu1 %v309_v18  ;;  %v277_v33 = vld [vmem:[#allocation5 + $0x20] sm:$0xff]  ;;  %v292_v35 = vld [vmem:[#allocation5 + $0x98] sm:$0xff]  ;;  %v291_v38 = vld [vmem:[#allocation5 + $0x90] sm:$0xff] }
  0x61   : > { %689 = vmatprep.subr.mxu0 %v299_v12  ;;  %748 = vmatprep.subr.mxu1 %v1023_v0  ;;  %v272_v34 = vld [vmem:[%s1178_s17 + $0x10] sm:$0xff]  ;;  %v275_v39 = vld [vmem:[#allocation5 + $0x10] sm:$0xff]  ;;  %v290_v41 = vld [vmem:[#allocation5 + $0x88] sm:$0xff] }
  0x62   : > { %690 = vmatpush3.msra.mxu0 %v283_v14  ;;  %749 = vmatpush3.msra.mxu1 %v308_v21  ;;  %v276_v36 = vld [vmem:[#allocation5 + $0x18] sm:$0xff]  ;;  %v479_v40 = vld [vmem:[#allocation7 + $0x70] sm:$0xff]  ;;  %v274_v42 = vld [vmem:[#allocation5 + $0x8] sm:$0xff] }
  0x63   : > { %691 = vmatprep.subr.mxu0 %v298_v16  ;;  %750 = vmatprep.subr.mxu1 %v1023_v0  ;;  %v480_v37 = vld [vmem:[#allocation7 + $0x78] sm:$0xff]  ;;  %v478_v43 = vld [vmem:[#allocation7 + $0x68] sm:$0xff]  ;;  %v289_v44 = vld [vmem:[#allocation5 + $0x80] sm:$0xff] }
  0x64   : > { %692 = vmatpush3.msra.mxu0 %v282_v17  ;;  %388 = vmatprep.mubr.f32.mxu0 %v271_v24  ;;  %v273_v45 = vld [vmem:[#allocation5] sm:$0xff]  ;;  %v270_v47 = vld [vmem:[%s1178_s17] sm:$0xff]  ;;  %v476_v48 = vld [vmem:[#allocation7 + $0x58] sm:$0xff]  ;;  %s954_s17 = scalar_lea.vmem %s953_s22, 256 }
  0x65   : > { %693 = vmatprep.subr.mxu0 %v297_v19  ;;  %751 = vmatpush3.msra.mxu1 %v307_v26  ;;  %v477_v46 = vld [vmem:[#allocation7 + $0x60] sm:$0xff]  ;;  %v475_v49 = vld [vmem:[#allocation7 + $0x50] sm:$0xff]  ;;  %v474_v50 = vld [vmem:[#allocation7 + $0x48] sm:$0xff]  ;;  %p956_p12 = scmp.lt.s32.totalorder %s954_s17, %s948_s14 }
  0x66   : > { %694 = vmatpush3.msra.mxu0 %v281_v20  ;;  %752 = vmatprep.subr.mxu1 %v1023_v0  ;;  %v473_v51 = vld [vmem:[#allocation7 + $0x40] sm:$0xff]  ;;  %v472_v52 = vld [vmem:[#allocation7 + $0x38] sm:$0xff]  ;;  %v471_v53 = vld [vmem:[#allocation7 + $0x30] sm:$0xff] }
  0x67   : > { %695 = vmatprep.subr.mxu0 %v296_v22  ;;  %753 = vmatpush3.msra.mxu1 %v306_v29  ;;  %v470_v54 = vld [vmem:[#allocation7 + $0x28] sm:$0xff]  ;;  %v469_v55 = vld [vmem:[#allocation7 + $0x20] sm:$0xff]  ;;  %v468_v56 = vld [vmem:[#allocation7 + $0x18] sm:$0xff]  ;;  %p957_p7 = por %p956_p12, %p955_p6 }
  0x68   : > { %696 = vmatpush3.msra.mxu0 %v280_v23  ;;  %754 = vmatprep.subr.mxu1 %v1023_v0  ;;  %v467_v57 = vld [vmem:[#allocation7 + $0x10] sm:$0xff]  ;;  %v466_v58 = vld [vmem:[#allocation7 + $0x8] sm:$0xff]  ;;  %v465_v59 = vld [vmem:[#allocation7] sm:$0xff] }
  0x69   : > { %697 = vmatprep.subr.mxu0 %v295_v25  ;;  %755 = vmatpush3.msra.mxu1 %v305_v32  ;;  %v672_v1 = vld [vmem:[%s1269_s2] ss:$0 sm:$0xff]  ;;  %p958_p9 = pnand %p957_p7, %p951_p2 }
  0x6a   : > { %698 = vmatpush3.msra.mxu0 %v279_v27  ;;  %757 = vmatmul.mubr.msk.f32.vlgmr.msra.gmra.mxu1 %vm320_vm1, %v272_v34 }
  0x6b   : > { %699 = vmatprep.subr.mxu0 %v294_v28  ;;  %759 = vmatprep.subr.mxu1 %v1023_v0 }
  0x6c   : > { %700 = vmatpush3.msra.mxu0 %v278_v30  ;;  %760 = vmatpush3.msra.mxu1 %v480_v37 }
  0x6d   : > { %701 = vmatprep.subr.mxu0 %v293_v31  ;;  %761 = vmatprep.subr.mxu1 %v1023_v0 }
  0x6e   : > { %702 = vmatpush3.msra.mxu0 %v277_v33  ;;  %762 = vmatpush3.msra.mxu1 %v479_v40 }
  0x6f   : > { %703 = vmatprep.subr.mxu0 %v292_v35  ;;  %763 = vmatprep.subr.mxu1 %v1023_v0 }
  0x70   : > { %704 = vmatpush3.msra.mxu0 %v276_v36  ;;  %764 = vmatpush3.msra.mxu1 %v478_v43 }
  0x71   : > { %705 = vmatprep.subr.mxu0 %v291_v38  ;;  %765 = vmatprep.subr.mxu1 %v1023_v0 }
  0x72   : > { %706 = vmatpush3.msra.mxu0 %v275_v39  ;;  %766 = vmatpush3.msra.mxu1 %v477_v46 }
  0x73   : > { %707 = vmatprep.subr.mxu0 %v290_v41  ;;  %767 = vmatprep.subr.mxu1 %v1023_v0 }
  0x74   : > { %708 = vmatpush3.msra.mxu0 %v274_v42  ;;  %768 = vmatpush3.msra.mxu1 %v476_v48 }
  0x75   : > { %709 = vmatprep.subr.mxu0 %v289_v44  ;;  %791 = vmatprep.mubr.msk.f32.mxu1 %vm1024_vm0, %v1023_v0 }
  0x76   : > { %710 = vmatpush3.msra.mxu0 %v273_v45  ;;  %769 = vmatprep.subr.mxu1 %v1023_v0 }
  0x77   : > { %389 = vmatmul.mubr.f32.vlgmr.msra.gmra.mxu0 %v270_v47  ;;  %770 = vmatpush3.msra.mxu1 %v475_v49 }
  0x78   : > { %771 = vmatprep.subr.mxu1 %v1023_v0 }
  0x79   : > { %772 = vmatpush3.msra.mxu1 %v474_v50 }
  0x7a   : > { %773 = vmatprep.subr.mxu1 %v1023_v0 }
  0x7b   : > { %774 = vmatpush3.msra.mxu1 %v473_v51 }
  0x7c   : > { %775 = vmatprep.subr.mxu1 %v1023_v0 }
  0x7d   : > { %776 = vmatpush3.msra.mxu1 %v472_v52 }
  0x7e   : > { %777 = vmatprep.subr.mxu1 %v1023_v0 }
  0x7f   : > { %778 = vmatpush3.msra.mxu1 %v471_v53 }
  0x80   : > { %779 = vmatprep.subr.mxu1 %v1023_v0 }
  0x81   : > { %780 = vmatpush3.msra.mxu1 %v470_v54 }
  0x82   : > { %781 = vmatprep.subr.mxu1 %v1023_v0 }
  0x83   : > { %782 = vmatpush3.msra.mxu1 %v469_v55 }
  0x84   : > { %783 = vmatprep.subr.mxu1 %v1023_v0 }
  0x85   : > { %784 = vmatpush3.msra.mxu1 %v468_v56 }
  0x86   : > { %785 = vmatprep.subr.mxu1 %v1023_v0 }
  0x87   : > { %786 = vmatpush3.msra.mxu1 %v467_v57 }
  0x88   : > { %787 = vmatprep.subr.mxu1 %v1023_v0 }
  0x89   : > { %788 = vmatpush3.msra.mxu1 %v466_v58 }
  0x8a   : > { %789 = vmatprep.subr.mxu1 %v1023_v0  ;;  %v674_v0 = vld [vmem:[%s1271_s4] ss:$0 sm:$0xff] }
  0x8b   : > { %790 = vmatpush3.msra.mxu1 %v465_v59 }
 0x12a   : > { %v460_v60 = vpop.f32.mrf.mxu1 }
 0x12c   : > { %v758_v61 = vpop.f32.mrf.mxu1 }
 0x137   : > { %v711_v62 = vpop.f32.mrf.mxu0 }
 0x139   : > { %v712_v63 = vpop.f32.mrf.mxu0 }
 0x13a   : > { %v713_v2 = vadd.f32 %v712_v63, %v711_v62 }
 0x13c   : > { %v391_v3 = vadd.f32 %v713_v2, %v672_v1 }
 0x13e   : > { %v461_v4 = vadd.f32 %v460_v60, %v391_v3 }
 0x140   : > { %v464_v5 = vmax.f32 %v461_v4, 0.0 }
 0x142   : > { %792 = vmatmul.mubr.f32.vlgmr.msra.gmra.mxu1 %v464_v5 }
 0x202   : > { %v554_v6 = vpop.f32.mrf.mxu1 }
 0x203   : > { %v555_v7 = vadd.f32 %v674_v0, %v554_v6 }
 0x204   : > { %v793_v8 = vpop.f32.mrf.mxu1 }
 0x205   : > { %558 = vst [vmem:[%s269_s7] sm:$0xff] %v555_v7 }
 0x206   : > { %961 = shalt.err (!%p958_p9)
}
 0x207   : > { %s962_s24 = scalar_lea.hbm %s1230_s8, 128  ;;  %s966_s6 = scalar_lea.hbm %s1272_s5, 256 }
 0x208   : > { %p963_p13 = scmp.ne.s32.totalorder %s1230_s8, %s962_s24  ;;  %p967_p0 = scmp.lt.s32.totalorder %s1230_s8, %s1272_s5 }
 0x209   : > { %p968_p4 = scmp.lt.s32.totalorder %s966_s6, %s962_s24 }
 0x20a   : > { %p964_p5 = pnand %p963_p13, %p1288_p11 }
 0x20b   : > { %p969_p8 = por %p968_p4, %p967_p0 }
 0x20c   : > { %p965_p10 = pneg %p964_p5 }
 0x20e   : > { %p970_p3 = pnand %p969_p8, %p965_p10 }
 0x210   : > { %973 = shalt.err (!%p970_p3)
}
 0x211   : > { %807 = dma.vmem_to_hbm [thread:$0]  (%p1288_p11), %s574_s30, 128, %s1230_s8, %s560_s10  }
 0x212 PF: > { %s585_s12 = sand.u32 1, %s1004_s18   ;;  %p1289_p1 = scmp.ne.s32.totalorder %s1278_s25, 0 }
 0x213   : > { %p1290_p2 = scmp.ge.s32.totalorder %s1016_s21, 2  ;;  %s586_s7 = scalar_lea.sflag [#allocation4], %s585_s12 }
 0x215   : > { %p821_p6 = pnand %p1290_p2, %p1289_p1 }
 0x217   : > { %p822_p12 = pneg %p821_p6 }
 0x219   : > { %999 = dma.done.wait (%p822_p12), %s586_s7, 128  }
 0x21a   : > { %1001 = vsyncadd (%p822_p12), %s586_s7, 4294967168  ;;  %p19_p7 = scmp.ge.s32.totalorder %s1128_s15, 4   ;;  %s1291_s18 = smov %s1008_s19 }
 0x21b   : > { %s1292_s19 = smov %s1012_s20  ;;  %s1293_s20 = smov %s1144_s27 }
 0x21c   : > { %s1294_s21 = smov %s1128_s15  ;;  %21 = sbr.rel (!%p19_p7) target bundleno = 6 (0x6), region = 93 }
 0x221   :  { %591 = vsyncpa [#allocation3], 1 }
 0x222   :  { %593 = vsyncpa [#allocation3 + $0x1], 1 }
 0x223   :  { %594 = vsyncpa [#allocation6], 1 }
 0x224   :  { %595 = vsyncpa [#allocation4], 1 }
 0x225   :  { %597 = vsyncpa [#allocation4 + $0x1], 1 }

</bundles_post_ra>
